<compile_context>
chip_gen: v6e
topology: v6e:2x2x1
jax: 0.10.0
libtpu: 0.0.40
codegen_flags: <defaults>
</compile_context>

<pallas_src>
import math

import jax
import jax.numpy as jnp
from jax.experimental import pallas as pl
from jax.experimental.pallas import tpu as pltpu


# ---------------------------------------------------------------------------
# helpers
# ---------------------------------------------------------------------------

def _round_up(a: int, m: int) -> int:
    return ((a + m - 1) // m) * m


def _sublane_granule(dtype) -> int:
    # native sublane tiling: f32 -> 8, bf16 -> 16, int8/fp8 -> 32
    return {4: 8, 2: 16, 1: 32}.get(jnp.dtype(dtype).itemsize, 8)


def _vmem_budget_bytes() -> int:
    cap = 64 * 1024 * 1024            # conservative fallback (v7x per-TC VMEM)
    try:
        info = pltpu.get_tpu_info()
        cap = int(getattr(info, "vmem_capacity_bytes", cap) or cap)
    except Exception:
        pass
    # leave ~25% headroom for Mosaic internal scratch / semaphores
    return min((cap * 3) // 4, 100 * 1024 * 1024)


def _pick_tile(dim: int, granule: int, max_tile: int, waste: float = 0.12) -> int:
    """Largest tile (halving ladder from max_tile) with low last-block padding waste."""
    dim_g = _round_up(dim, granule)
    if dim_g <= max_tile:
        return dim_g
    cands = []
    t = max_tile
    while t >= granule and t % granule == 0:
        cands.append(t)
        t //= 2
    for t in cands:                                      # biggest first
        padded = _round_up(dim, t)
        if (padded - dim) / padded <= waste:
            return t
    return min(cands, key=lambda c: _round_up(dim, c))   # least absolute padding


# ---------------------------------------------------------------------------
# kernels
# ---------------------------------------------------------------------------

def _fused_kernel_1k(scale_ref, x_ref, skip_ref, w_ref, b_ref, o_ref):
    # Whole K fits one block: no accumulator scratch, no K-axis grid overhead.
    out = jnp.dot(x_ref[...], w_ref[...], preferred_element_type=jnp.float32)
    out = out + b_ref[...].astype(jnp.float32)        # inner(x) = x @ W + b
    out = out * scale_ref[0]                           # * scale
    out = out + skip_ref[...].astype(jnp.float32)      # + x[..., :N]
    o_ref[...] = out.astype(o_ref.dtype)


def _fused_kernel_multik(scale_ref, x_ref, skip_ref, w_ref, b_ref, o_ref, acc_ref):
    k = pl.program_id(2)

    @pl.when(k == 0)
    def _():
        acc_ref[...] = jnp.zeros_like(acc_ref)

    acc_ref[...] += jnp.dot(x_ref[...], w_ref[...],
                            preferred_element_type=jnp.float32)

    @pl.when(k == pl.num_programs(2) - 1)
    def _():
        out = acc_ref[...] + b_ref[...].astype(jnp.float32)
        out = out * scale_ref[0]
        out = out + skip_ref[...].astype(jnp.float32)
        o_ref[...] = out.astype(o_ref.dtype)


# ---------------------------------------------------------------------------
# wrapper
# ---------------------------------------------------------------------------

def skip_connection_linear(x, w, b, scale, *, compute_dtype=None,
                           tm=None, tn=None, tk=None):
    """SkipConnection(Linear(K, N), id_init=True) forward.

    x: [..., K]; w: [K, N] (torch weight already transposed); b: [N]; scale: [1].
    Requires N <= K.  Returns [..., N].
    """
    *lead, K = x.shape
    Kw, N = w.shape
    assert Kw == K and N <= K, (K, Kw, N)
    M = math.prod(lead) if lead else 1
    out_dtype = x.dtype

    lhs_dtype = jnp.dtype(compute_dtype) if compute_dtype is not None else jnp.dtype(x.dtype)
    in_bytes = lhs_dtype.itemsize
    skip_bytes = jnp.dtype(x.dtype).itemsize
    out_bytes = jnp.dtype(out_dtype).itemsize

    # ---- generation-aware tile caps & VMEM budget ---------------------------
    budget = _vmem_budget_bytes()
    big_vmem = budget >= 72 * 1024 * 1024            # v5e / v6e (128 MiB physical)
    tm_max = tn_max = 1024 if big_vmem else 512      # v7x (64 MiB) stays at 512
    tk_max = 512

    gm = max(_sublane_granule(x.dtype), _sublane_granule(lhs_dtype))

    tm_eff = tm if tm is not None else _pick_tile(M, gm, tm_max)
    tn_eff = tn if tn is not None else _pick_tile(N, 128, tn_max)
    Np = _round_up(N, tn_eff)
    K_need = max(K, Np)                  # skip block (i, j) on x must stay in bounds
    tk_eff = tk if tk is not None else _pick_tile(K_need, 128, tk_max)

    # ---- keep the double-buffered footprint inside the VMEM budget ----------
    def _footprint(tm_, tn_, tk_):
        fp = 2 * (tm_ * tk_ + tk_ * tn_) * in_bytes   # LHS + W streams (2 buffers each)
        fp += 2 * tm_ * tn_ * skip_bytes              # skip stream
        fp += 2 * tm_ * tn_ * out_bytes               # output
        fp += 2 * 8 * tn_ * 4                         # bias (sublane-padded)
        fp += tm_ * tn_ * 4                           # f32 accumulator (worst case)
        return fp

    while _footprint(tm_eff, tn_eff, tk_eff) > budget:
        if tk_eff >= max(tm_eff, tn_eff) and tk_eff // 2 >= 128:
            tk_eff //= 2
        elif tm_eff >= tn_eff and tm_eff // 2 >= gm and (tm_eff // 2) % gm == 0:
            tm_eff //= 2
        elif tn_eff // 2 >= 128:
            tn_eff //= 2
        else:
            break

    # ---- padded problem sizes ------------------------------------------------
    Mp = _round_up(M, tm_eff)
    Np = _round_up(N, tn_eff)
    K_need = max(K, Np)
    Kp = _round_up(K_need, tk_eff)

    # ---- guarantee >=2 parallel output blocks (v7x: 2 TensorCores/chip) ------
    if (Mp // tm_eff) * (Np // tn_eff) == 1:
        if tm_eff // 2 >= gm and (tm_eff // 2) % gm == 0:
            tm_eff //= 2
        elif tn_eff // 2 >= 128:
            tn_eff //= 2
        Mp = _round_up(M, tm_eff)
        Np = _round_up(N, tn_eff)
        K_need = max(K, Np)
        Kp = _round_up(K_need, tk_eff)

    n_m, n_n, n_k = Mp // tm_eff, Np // tn_eff, Kp // tk_eff
    multi_k = n_k > 1

    # ---- operand preparation (padding is a no-op for aligned shapes) ---------
    x2 = x.reshape(M, K)
    # TODO(synk): for very large ragged inputs, a masked last M/K block inside the
    # kernel would avoid this wrapper-side pad copy of x.
    if (Mp, Kp) != (M, K):
        x2 = jnp.pad(x2, ((0, Mp - M), (0, Kp - K)))
    x_lhs = x2.astype(lhs_dtype) if lhs_dtype != x2.dtype else x2
    w2 = w.astype(lhs_dtype) if jnp.dtype(w.dtype) != lhs_dtype else w
    if (Kp, Np) != (K, N):
        w2 = jnp.pad(w2, ((0, Kp - K), (0, Np - N)))
    b2 = b.reshape(1, N).astype(jnp.float32)
    if Np != N:
        b2 = jnp.pad(b2, ((0, 0), (0, Np - N)))
    scale = scale.reshape(1).astype(jnp.float32)

    smem_spec = pl.BlockSpec(memory_space=pltpu.MemorySpace.SMEM)
    cost = pl.CostEstimate(
        flops=2 * M * K * N,
        transcendentals=0,
        bytes_accessed=(M * K * n_n + K * N * n_m) * in_bytes
        + M * N * skip_bytes + M * N * out_bytes,
    )

    if multi_k:
        kernel = _fused_kernel_multik
        grid = (n_m, n_n, n_k)
        in_specs = [
            smem_spec,                                                 # scale
            pl.BlockSpec((tm_eff, tk_eff), lambda i, j, k: (i, k)),    # x (LHS)
            pl.BlockSpec((tm_eff, tn_eff), lambda i, j, k: (i, j)),    # x (skip, resident over k)
            pl.BlockSpec((tk_eff, tn_eff), lambda i, j, k: (k, j)),    # W
            pl.BlockSpec((1, tn_eff), lambda i, j, k: (0, j)),         # bias
        ]
        out_spec = pl.BlockSpec((tm_eff, tn_eff), lambda i, j, k: (i, j))
        scratch = [pltpu.VMEM((tm_eff, tn_eff), jnp.float32)]
        dims = ("parallel", "parallel", "arbitrary")
    else:
        kernel = _fused_kernel_1k
        grid = (n_m, n_n)
        in_specs = [
            smem_spec,                                                 # scale
            pl.BlockSpec((tm_eff, tk_eff), lambda i, j: (i, 0)),       # x (LHS, whole K)
            pl.BlockSpec((tm_eff, tn_eff), lambda i, j: (i, j)),       # x (skip)
            pl.BlockSpec((tk_eff, tn_eff), lambda i, j: (0, j)),       # W
            pl.BlockSpec((1, tn_eff), lambda i, j: (0, j)),            # bias
        ]
        out_spec = pl.BlockSpec((tm_eff, tn_eff), lambda i, j: (i, j))
        scratch = []
        dims = ("parallel", "parallel")

    out = pl.pallas_call(
        kernel,
        out_shape=jax.ShapeDtypeStruct((Mp, Np), out_dtype),
        grid=grid,
        in_specs=in_specs,
        out_specs=out_spec,
        scratch_shapes=scratch,
        compiler_params=pltpu.CompilerParams(
            dimension_semantics=dims,
            vmem_limit_bytes=budget,
        ),
        cost_estimate=cost,
    )(scale, x_lhs, x2, w2, b2)

    out = out[:M, :N]
    return out.reshape(*lead, N) if lead else out.reshape(N)


# ---------------------------------------------------------------------------
# self-test
# ---------------------------------------------------------------------------

if __name__ == "__main__":
    key = jax.random.PRNGKey(0)
    ks = jax.random.split(key, 8)

    def reference(x, w, b, scale):
        out = jnp.einsum("...k,kn->...n", x, w) + b
        out = out * scale[0]
        return x[..., : out.shape[-1]] + out

    # main: SkipConnection(Linear(32 -> 16), id_init=True); batch=2, seq=8
    batch, seq, h_in, h_out = 2, 8, 32, 16
    x = jax.random.normal(ks[0], (batch, seq, h_in), jnp.float32)
    w = jax.random.normal(ks[1], (h_in, h_out), jnp.float32) / math.sqrt(h_in)
    b = jax.random.normal(ks[2], (h_out,), jnp.float32) * 0.1

    scale0 = jnp.zeros((1,), jnp.float32)          # id_init=True -> scale starts at 0
    y = skip_connection_linear(x, w, b, scale0)
    jax.block_until_ready(y)
    assert y.shape == (batch, seq, h_out)
    assert jnp.allclose(y, reference(x, w, b, scale0), atol=1e-5, rtol=1e-5)

    scale1 = jnp.array([0.7], jnp.float32)         # non-zero scale path
    y1 = skip_connection_linear(x, w, b, scale1)
    assert jnp.allclose(y1, reference(x, w, b, scale1), atol=1e-5, rtol=1e-5)

    # ragged shapes: exercises M/N/K padding + the >=2-parallel-block split
    xr = jax.random.normal(ks[3], (3, 5, 40), jnp.float32)
    wr = jax.random.normal(ks[4], (40, 24), jnp.float32) / math.sqrt(40.0)
    br = jax.random.normal(ks[5], (24,), jnp.float32) * 0.1
    yr = skip_connection_linear(xr, wr, br, scale1)
    assert yr.shape == (3, 5, 24)
    assert jnp.allclose(yr, reference(xr, wr, br, scale1), atol=1e-5, rtol=1e-5)

    # multi-K-block accumulator path (tk forced small so K=256 spans 2 K blocks)
    xk = jax.random.normal(ks[6], (4, 8, 256), jnp.float32)
    wk = jax.random.normal(ks[7], (256, 128), jnp.float32) / math.sqrt(256.0)
    bk = jnp.zeros((128,), jnp.float32)
    yk = skip_connection_linear(xk, wk, bk, scale1, tk=128)
    assert jnp.allclose(yk, reference(xk, wk, bk, scale1), atol=1e-4, rtol=1e-4)

    # optional bf16 MXU path (bf16 LHS/W stream, f32 accumulation, exact f32 skip)
    def reference_bf16(x, w, b, scale):
        out = jnp.einsum("...k,kn->...n",
                         x.astype(jnp.bfloat16), w.astype(jnp.bfloat16),
                         preferred_element_type=jnp.float32) + b
        out = out * scale[0]
        return x[..., : out.shape[-1]] + out

    yb = skip_connection_linear(x, w, b, scale1, compute_dtype=jnp.bfloat16)
    assert jnp.allclose(yb, reference_bf16(x, w, b, scale1), atol=2e-2, rtol=2e-2)

    jax.block_until_ready((y, y1, yr, yk, yb))
    print("KERNEL_OK")
</pallas_src>

<mosaic_0001>
module attributes {stable_mosaic.version = 11 : i64} {
  func.func @_fused_kernel_1k(%arg0: i32, %arg1: i32, %arg2: memref<1xf32, #tpu.memory_space<smem>>, %arg3: memref<8x128xf32, #tpu.memory_space<vmem>>, %arg4: memref<8x128xf32, #tpu.memory_space<vmem>>, %arg5: memref<128x128xf32, #tpu.memory_space<vmem>>, %arg6: memref<1x128xf32, #tpu.memory_space<vmem>>, %arg7: memref<8x128xf32, #tpu.memory_space<vmem>>) attributes {dimension_semantics = [#tpu.dimension_semantics<parallel>, #tpu.dimension_semantics<parallel>], iteration_bounds = array<i64: 2, 1>, scalar_prefetch = 0 : i64, scratch_operands = 0 : i64, tpu.core_type = #tpu.core_type<tc>, window_params = [{transform_indices = @transform_0, window_bounds = array<i64: 1>}, {transform_indices = @transform_1, window_bounds = array<i64: 8, 128>}, {transform_indices = @transform_2, window_bounds = array<i64: 8, 128>}, {transform_indices = @transform_3, window_bounds = array<i64: 128, 128>}, {transform_indices = @transform_4, window_bounds = array<i64: 1, 128>}, {transform_indices = @transform_5, window_bounds = array<i64: 8, 128>}]} {
    %c0 = arith.constant 0 : index
    %c0_0 = arith.constant 0 : index
    %0 = vector.load %arg3[%c0, %c0_0] : memref<8x128xf32, #tpu.memory_space<vmem>>, vector<8x128xf32>
    %c0_1 = arith.constant 0 : index
    %c0_2 = arith.constant 0 : index
    %1 = vector.load %arg5[%c0_1, %c0_2] : memref<128x128xf32, #tpu.memory_space<vmem>>, vector<128x128xf32>
    %cst = arith.constant dense<0.000000e+00> : vector<8x128xf32>
    %2 = tpu.matmul %0, %1, %cst {dimension_numbers = #tpu.dot_dimension_numbers<[1], [0], [0], [1], [0, 0, 1, 1], [], []>} : vector<8x128xf32>, vector<128x128xf32>, vector<8x128xf32> -> vector<8x128xf32>
    %c0_3 = arith.constant 0 : index
    %c0_4 = arith.constant 0 : index
    %3 = vector.load %arg6[%c0_3, %c0_4] : memref<1x128xf32, #tpu.memory_space<vmem>>, vector<1x128xf32>
    %4 = vector.broadcast %3 : vector<1x128xf32> to vector<8x128xf32>
    %5 = arith.addf %2, %4 : vector<8x128xf32>
    %c0_5 = arith.constant 0 : index
    %6 = memref.load %arg2[%c0_5] : memref<1xf32, #tpu.memory_space<smem>>
    %7 = vector.broadcast %6 : f32 to vector<8x128xf32>
    %8 = arith.mulf %5, %7 : vector<8x128xf32>
    %c0_6 = arith.constant 0 : index
    %c0_7 = arith.constant 0 : index
    %9 = vector.load %arg4[%c0_6, %c0_7] : memref<8x128xf32, #tpu.memory_space<vmem>>, vector<8x128xf32>
    %10 = arith.addf %8, %9 : vector<8x128xf32>
    %c0_8 = arith.constant 0 : index
    %c0_9 = arith.constant 0 : index
    %11 = vector.load %arg7[%c0_8, %c0_9] : memref<8x128xf32, #tpu.memory_space<vmem>>, vector<8x128xf32>
    tpu.vector_store %arg7[%c0_8, %c0_9], %10 {strides = array<i32>} : memref<8x128xf32, #tpu.memory_space<vmem>>, vector<8x128xf32>,
    return
  }
  func.func @transform_0(%arg0: i32, %arg1: i32) -> i32 {
    %c0_i32 = arith.constant 0 : i32
    %c0_i32_0 = arith.constant 0 : i32
    return %c0_i32 : i32
  }
  func.func @transform_1(%arg0: i32, %arg1: i32) -> (i32, i32) {
    %c0_i32 = arith.constant 0 : i32
    %c0_i32_0 = arith.constant 0 : i32
    return %arg0, %c0_i32 : i32, i32
  }
  func.func @transform_2(%arg0: i32, %arg1: i32) -> (i32, i32) {
    %c0_i32 = arith.constant 0 : i32
    return %arg0, %arg1 : i32, i32
  }
  func.func @transform_3(%arg0: i32, %arg1: i32) -> (i32, i32) {
    %c0_i32 = arith.constant 0 : i32
    %c0_i32_0 = arith.constant 0 : i32
    return %c0_i32, %arg1 : i32, i32
  }
  func.func @transform_4(%arg0: i32, %arg1: i32) -> (i32, i32) {
    %c0_i32 = arith.constant 0 : i32
    %c0_i32_0 = arith.constant 0 : i32
    return %c0_i32, %arg1 : i32, i32
  }
  func.func @transform_5(%arg0: i32, %arg1: i32) -> (i32, i32) {
    %c0_i32 = arith.constant 0 : i32
    return %arg0, %arg1 : i32, i32
  }
}

</mosaic_0001>

<bundles_post_ra>
// kernel: tpu_custom_call.1
= control target key start
LH: loop header
LB: loop body
LE: loop exit
PB: predicated region body
PF: predicated region fallthrough
CT: control target
= control target key end

     0   :  { %s1133_s0 = inlined_call_operand.<no memory space> [shape: f32[1], index: 0, kind: input, shape index: {}]   ;;  %s1134_s1 = inlined_call_operand.hbm [shape: f32[16,128], index: 1, kind: input, shape index: {}]   ;;  %s1135_s2 = inlined_call_operand.hbm [shape: f32[16,128], index: 2, kind: input, shape index: {}]   ;;  %s1136_s3 = inlined_call_operand.hbm [shape: f32[128,128], index: 3, kind: input, shape index: {}]   ;;  %s1137_s4 = inlined_call_operand.vmem [shape: f32[1,128], index: 4, kind: input, shape index: {}]   ;;  %s1138_s5 = inlined_call_operand.hbm [shape: f32[16,128], index: 5, kind: output, shape index: {}]  }
   0x1   :  { %1140 = sst [smem:[#allocation15_spill]] %s1136_s3 }
   0x2   :  { %10 = sst [smem:[#allocation2]] %s1133_s0 }
   0x3   :  { %11 = vsyncpa [#allocation4], 0 }
   0x4   :  { %13 = vsyncpa [#allocation4 + $0x1], 0 }
   0x5   :  { %14 = vsyncpa [#allocation7], 0 }
   0x6   :  { %16 = vsyncpa [#allocation7 + $0x1], 0 }
   0x7   :  { %17 = vsyncpa [#allocation5], 0 }
   0x8   :  { %19 = vsyncpa [#allocation5 + $0x1], 0  ;;  %s938_s20 = smov 0   ;;  %s940_s21 = smov 0  }
   0x9   :  { %s942_s22 = smov 0   ;;  %s944_s23 = smov 0  }
   0xa   :  { %s946_s24 = smov 0   ;;  %s948_s25 = smov 0  }
   0xb LB: > { %s969_s0 = sadd.s32 4294967295, %s895_s25   ;;  %s572_s26 = sadd.s32 4294967294, %s895_s25   ;;  %s895_s25 = sphi %s948_s25, %s25_s25   ;;  %s891_s24 = sphi %s946_s24, %s1158_s24   ;;  %s887_s23 = sphi %s944_s23, %s1157_s23   ;;  %s883_s22 = sphi %s942_s22, %s1156_s22   ;;  %s879_s21 = sphi %s940_s21, %s1155_s21   ;;  %s875_s20 = sphi %s938_s20, %s1154_s20  }
   0xc   : > { %p78_p0 = scmp.ne.s32.totalorder %s879_s21, %s875_s20  ;;  %p79_p1 = scmp.eq.s32.totalorder %s969_s0, 0 }
   0xd   : > { %p190_p3 = scmp.eq.s32.totalorder %s572_s26, 1  ;;  %p573_p5 = scmp.ge.s32.totalorder %s895_s25, 1 }
   0xe   : > { %p978_p4 = por %p79_p1, %p78_p0  ;;  %p197_p7 = scmp.lt.s32.totalorder %s895_s25, 3 }
   0xf   : > { %p983_p6 = por %p190_p3, %p78_p0  ;;  %s897_s30 = smov [#allocation8]  }
  0x10   : > { %p988_p8 = pnand %p573_p5, %p197_p7  ;;  %s214_s6 = sshll.u32 %s897_s30, 4  ;;  %s215_s6 = int_to_ptr.vmem [resolvable:$true] %s214_s6 }
  0x11   : > { %s1142_s28 = scalar_select %p983_p6, 1, 0 }
  0x12   : > { %p653_p9 = pneg %p988_p8  ;;  %s37_s8 = sadd.s32 1, %s891_s24 }
  0x13   : > { %s736_s9 = scalar_lea.vmem %s215_s6, 2048  ;;  %p744_p5 = scmp.lt.s32.totalorder %s215_s6, %s215_s6 }
  0x14   : > { %p997_p11 = pnand %p653_p9, %p79_p1  ;;  %p737_p13 = scmp.ne.s32.totalorder %s215_s6, %s736_s9 }
  0x15   : > { %p745_p7 = scmp.lt.s32.totalorder %s736_s9, %s736_s9 }
  0x16   : > { %p727_p12 = pneg %p997_p11 }
  0x17   : > { %p746_p2 = por %p745_p7, %p744_p5 }
  0x18   : > { %p739_p0 = pnand %p737_p13, %p727_p12 }
  0x1a   : > { %p740_p3 = pneg %p739_p0 }
  0x1c   : > { %p747_p6 = pnand %p746_p2, %p740_p3 }
  0x1e   : > { %750 = shalt.err (!%p747_p6)
}
  0x1f   : > { %s898_s10 = smov 128   ;;  %s899_s11 = smov 8  }
  0x20   : > { %s1145_s3 = sld [smem:[#allocation15_spill]]  ;;  %p39_p2 = scmp.ge.s32.totalorder %s37_s8, 2 }
  0x21   : > { %s65_s14 = sadd.s32 1, %s883_s22  ;;  %p72_p6 = scmp.ne.s32.totalorder %s883_s22, %s879_s21 }
  0x22   : > { %p73_p9 = scmp.eq.s32.totalorder %s895_s25, 0  ;;  %s1160_s8 = smov (%p39_p2, %s37_s8), 0 }
  0x23   : > { %1146 = sst [smem:[#allocation14_spill]] %s1160_s8  ;;  %p1148_p13 = scmp.eq.s32.totalorder %s969_s0, 1 }
  0x24   : > { %p1015_p12 = por %p73_p9, %p72_p6  ;;  %s62_s17 = ssub.s32 %s891_s24, %s1160_s8 }
  0x25   : > { %p1021_p0 = por %p1148_p13, %p72_p6  ;;  %p63_p3 = scmp.eq.s32.totalorder %s62_s17, 0 }
  0x26   : > { %656 = dma.hbm_to_vmem [thread:$0]  (!%p997_p11), %s1145_s3, 2048, %s215_s6, [#allocation7], %s898_s10, %s898_s10, %s899_s11  }
  0x27   : > { %p669_p11 = scmp.lt.s32.totalorder %s895_s25, 2  ;;  %s234_s18 = sand.u32 1, %s883_s22  }
  0x28   : > { %s577_s19 = sshll.u32 %s234_s18, 3  ;;  %s578_s30 = sshll.u32 %s891_s24, 7 }
  0x29   : > { %s1030_s26 = scalar_select %p63_p3, %s883_s22, %s65_s14  }
  0x2a   : > { %s243_s9 = scalar_lea.hbm %s1134_s1, %s578_s30  ;;  %s238_s10 = scalar_lea.vmem [#allocation3], %s577_s19 }
  0x2b   : > { %s245_s11 = sshll.u32 %s238_s10, 4  ;;  %p1038_p5 = pnand %p669_p11, %p1015_p12  ;;  %s246_s11 = int_to_ptr.vmem [resolvable:$true] %s245_s11 }
  0x2c   : > { %s1045_s14 = scalar_lea.hbm %s1135_s2, %s578_s30  ;;  %s252_s17 = sand.u32 1, %s895_s25  }
  0x2d   : > { %s235_s8 = scalar_lea.sflag [#allocation4], %s234_s18  ;;  %p753_p7 = pneg %p1038_p5 }
  0x2e   : > { %s764_s6 = scalar_lea.vmem %s246_s11, 128  ;;  %s900_s15 = smov [#allocation3]  }
  0x2f   : > { %p765_p2 = scmp.ne.s32.totalorder %s246_s11, %s764_s6  ;;  %s769_s7 = sshll.u32 %s900_s15, 4  ;;  %s770_s7 = int_to_ptr.vmem [resolvable:$false] %s769_s7 }
  0x30   : > { %s771_s10 = scalar_lea.vmem %s770_s7, 256  ;;  %p772_p12 = scmp.lt.s32.totalorder %s246_s11, %s770_s7 }
  0x31   : > { %p767_p6 = pnand %p765_p2, %p753_p7  ;;  %p773_p13 = scmp.lt.s32.totalorder %s771_s10, %s764_s6 }
  0x33   : > { %p768_p9 = pneg %p767_p6  ;;  %p774_p11 = por %p773_p13, %p772_p12 }
  0x35   : > { %p775_p3 = pnand %p774_p11, %p768_p9 }
  0x37   : > { %778 = shalt.err (!%p775_p3)
}
  0x38   : > { %660 = dma.hbm_to_vmem [thread:$0]  (!%p1038_p5), %s243_s9, 128, %s246_s11, %s235_s8  }
  0x39   : > { %s256_s3 = scalar_lea.vmem [#allocation6], %s577_s19  ;;  %s253_s30 = scalar_lea.sflag [#allocation7], %s252_s17 }
  0x3a   : > { %s264_s18 = sshll.u32 %s256_s3, 4  ;;  %s901_s15 = smov [#allocation6]   ;;  %s265_s18 = int_to_ptr.vmem [resolvable:$true] %s264_s18 }
  0x3b   : > { %s792_s13 = scalar_lea.vmem %s265_s18, 128  ;;  %s797_s7 = sshll.u32 %s901_s15, 4  ;;  %s798_s7 = int_to_ptr.vmem [resolvable:$false] %s797_s7 }
  0x3c   : > { %p793_p2 = scmp.ne.s32.totalorder %s265_s18, %s792_s13  ;;  %s799_s6 = scalar_lea.vmem %s798_s7, 256 }
  0x3d   : > { %p800_p9 = scmp.lt.s32.totalorder %s265_s18, %s798_s7  ;;  %p801_p12 = scmp.lt.s32.totalorder %s799_s6, %s792_s13 }
  0x3e   : > { %p795_p6 = pnand %p793_p2, %p753_p7 }
  0x3f   : > { %p802_p13 = por %p801_p12, %p800_p9 }
  0x40   : > { %p796_p10 = pneg %p795_p6 }
  0x42   : > { %p803_p11 = pnand %p802_p13, %p796_p10 }
  0x44   : > { %806 = shalt.err (!%p803_p11)
}
  0x45   : > { %663 = dma.hbm_to_vmem [thread:$0]  (!%p1038_p5), %s1045_s14, 128, %s265_s18, %s253_s30  }
  0x46   : > { %273 = sbr.rel (%p988_p8) target bundleno = 326 (0x146), region = 40  ;;  %s1064_s8 = sand.u32 (!%p988_p8), 1, %s879_s21  }
  0x47   : > { %s1067_s19 = sshll.u32 (!%p988_p8), %s1064_s8, 3  ;;  %s276_s9 = scalar_lea.sflag (!%p988_p8), [#allocation4], %s1064_s8 }
  0x48   : > { %s279_s11 = scalar_lea.vmem (!%p988_p8), [#allocation3], %s1067_s19 }
  0x4b   : > { %858 = dma.done.wait (%p978_p4), %s276_s9, 128  }
  0x4c   : > { %860 = vsyncadd (%p978_p4), %s276_s9, 4294967168  ;;  %s284_s29 = sand.u32 1, %s969_s0   ;;  %s288_s14 = scalar_lea.vmem [#allocation6], %s1067_s19 }
  0x4d   : > { %s285_s12 = scalar_lea.sflag [#allocation7], %s284_s29 }
  0x4e   : > { %862 = dma.done.wait (%p978_p4), %s285_s12, 128  }
  0x4f   : > { %864 = vsyncadd (%p978_p4), %s285_s12, 4294967168 }
  0x50   : > { %866 = dma.done.wait (%p79_p1), [#allocation7], 2048  }
  0x51   : > { %868 = vsyncadd (%p79_p1), [#allocation7], 4294965248  ;;  %v902_v0 = vmov 0.0   ;;  %vm903_vm0 = vmmov 0   ;;  %v346_v1 = vld [vmem:[#allocation8 + $0x78] sm:$0xff]  ;;  %v345_v2 = vld [vmem:[#allocation8 + $0x70] sm:$0xff] }
  0x52   : > { %608 = vmatprep.subr.mxu0 %v902_v0  ;;  %640 = vmatprep.mubr.msk.f32.mxu0 %vm903_vm0, %v902_v0  ;;  %v344_v3 = vld [vmem:[#allocation8 + $0x68] sm:$0xff]  ;;  %v343_v4 = vld [vmem:[#allocation8 + $0x60] sm:$0xff]  ;;  %v342_v5 = vld [vmem:[#allocation8 + $0x58] sm:$0xff]  ;;  %s424_s0 = sld [smem:[#allocation2]]  ;;  %s588_s10 = sshll.u32 %s887_s23, 7 }
  0x53   : > { %609 = vmatpush3.msra.mxu0 %v346_v1  ;;  %v341_v6 = vld [vmem:[#allocation8 + $0x50] sm:$0xff]  ;;  %v340_v7 = vld [vmem:[#allocation8 + $0x48] sm:$0xff]  ;;  %v339_v8 = vld [vmem:[#allocation8 + $0x40] sm:$0xff]  ;;  %s326_s3 = scalar_lea.vmem [#allocation9], %s1067_s19  ;;  %s443_s15 = scalar_lea.hbm %s1138_s5, %s588_s10 }
  0x54   : > { %610 = vmatprep.subr.mxu0 %v902_v0  ;;  %v338_v9 = vld [vmem:[#allocation8 + $0x38] sm:$0xff]  ;;  %v337_v10 = vld [vmem:[#allocation8 + $0x30] sm:$0xff]  ;;  %v336_v11 = vld [vmem:[#allocation8 + $0x28] sm:$0xff]  ;;  %s445_s18 = sshll.u32 %s326_s3, 4  ;;  %s431_s7 = scalar_lea.sflag [#allocation5], %s1064_s8  ;;  %s446_s18 = int_to_ptr.vmem [resolvable:$true] %s445_s18 }
  0x55   : > { %611 = vmatpush3.msra.mxu0 %v345_v2  ;;  %v335_v12 = vld [vmem:[#allocation8 + $0x20] sm:$0xff]  ;;  %v334_v13 = vld [vmem:[#allocation8 + $0x18] sm:$0xff]  ;;  %v333_v14 = vld [vmem:[#allocation8 + $0x10] sm:$0xff]  ;;  %s807_s6 = scalar_lea.vmem %s446_s18, 128  ;;  %s904_s9 = smov [#allocation9]  }
  0x56   : > { %612 = vmatprep.subr.mxu0 %v902_v0  ;;  %v332_v15 = vld [vmem:[#allocation8 + $0x8] sm:$0xff]  ;;  %v331_v16 = vld [vmem:[#allocation8] sm:$0xff]  ;;  %v427_v22 = vld [vmem:[%s288_s14] sm:$0xff]  ;;  %p808_p1 = scmp.ne.s32.totalorder %s446_s18, %s807_s6 }
  0x57   : > { %613 = vmatpush3.msra.mxu0 %v344_v3  ;;  %v330_v17 = vld [vmem:[%s279_s11] sm:$0xff]  ;;  %s811_s11 = sshll.u32 %s904_s9, 4  ;;  %s812_s11 = int_to_ptr.vmem [resolvable:$false] %s811_s11 }
  0x58   : > { %614 = vmatprep.subr.mxu0 %v902_v0  ;;  %v586_v18 = vld [vmem:[%s1137_s4] ss:$0 sm:$0xff]  ;;  %v425_v20 = vstv %s424_s0  ;;  %p809_p4 = pnand %p808_p1, %p1021_p0  ;;  %s813_s23 = scalar_lea.vmem %s812_s11, 256 }
  0x59   : > { %615 = vmatpush3.msra.mxu0 %v343_v4  ;;  %p814_p10 = scmp.lt.s32.totalorder %s446_s18, %s812_s11  ;;  %p815_p5 = scmp.lt.s32.totalorder %s813_s23, %s807_s6 }
  0x5a   : > { %616 = vmatprep.subr.mxu0 %v902_v0  ;;  %p810_p8 = pneg %p809_p4 }
  0x5b   : > { %617 = vmatpush3.msra.mxu0 %v342_v5  ;;  %p816_p7 = por %p815_p5, %p814_p10 }
  0x5c   : > { %618 = vmatprep.subr.mxu0 %v902_v0 }
  0x5d   : > { %619 = vmatpush3.msra.mxu0 %v341_v6  ;;  %p817_p3 = pnand %p816_p7, %p810_p8 }
  0x5e   : > { %620 = vmatprep.subr.mxu0 %v902_v0 }
  0x5f   : > { %621 = vmatpush3.msra.mxu0 %v340_v7 }
  0x60   : > { %622 = vmatprep.subr.mxu0 %v902_v0 }
  0x61   : > { %623 = vmatpush3.msra.mxu0 %v339_v8 }
  0x62   : > { %624 = vmatprep.subr.mxu0 %v902_v0 }
  0x63   : > { %625 = vmatpush3.msra.mxu0 %v338_v9 }
  0x64   : > { %626 = vmatprep.subr.mxu0 %v902_v0 }
  0x65   : > { %627 = vmatpush3.msra.mxu0 %v337_v10 }
  0x66   : > { %628 = vmatprep.subr.mxu0 %v902_v0 }
  0x67   : > { %629 = vmatpush3.msra.mxu0 %v336_v11 }
  0x68   : > { %630 = vmatprep.subr.mxu0 %v902_v0 }
  0x69   : > { %631 = vmatpush3.msra.mxu0 %v335_v12 }
  0x6a   : > { %632 = vmatprep.subr.mxu0 %v902_v0 }
  0x6b   : > { %633 = vmatpush3.msra.mxu0 %v334_v13 }
  0x6c   : > { %634 = vmatprep.subr.mxu0 %v902_v0 }
  0x6d   : > { %635 = vmatpush3.msra.mxu0 %v333_v14 }
  0x6e   : > { %636 = vmatprep.subr.mxu0 %v902_v0 }
  0x6f   : > { %637 = vmatpush3.msra.mxu0 %v332_v15 }
  0x70   : > { %638 = vmatprep.subr.mxu0 %v902_v0 }
  0x71   : > { %639 = vmatpush3.msra.mxu0 %v331_v16 }
  0x72   : > { %641 = vmatmul.mubr.f32.vlgmr.msra.gmra.mxu0 %v330_v17 }
 0x132   : > { %v420_v19 = vpop.f32.mrf.mxu0 }
 0x133   : > { %v421_v21 = vadd.f32 %v586_v18, %v420_v19 }
 0x134   : > { %v642_v23 = vpop.f32.mrf.mxu0 }
 0x135   : > { %v426_v24 = vmul.f32 %v425_v20, %v421_v21 }
 0x137   : > { %v428_v25 = vadd.f32 %v427_v22, %v426_v24 }
 0x139   : > { %429 = vst [vmem:[%s326_s3] sm:$0xff] %v428_v25 }
 0x13a   : > { %820 = shalt.err (!%p817_p3)
}
 0x13b   : > { %s821_s19 = scalar_lea.hbm %s443_s15, 128  ;;  %s825_s12 = scalar_lea.hbm %s1138_s5, 256 }
 0x13c   : > { %p822_p2 = scmp.ne.s32.totalorder %s443_s15, %s821_s19  ;;  %p826_p12 = scmp.lt.s32.totalorder %s443_s15, %s1138_s5 }
 0x13d   : > { %p827_p13 = scmp.lt.s32.totalorder %s825_s12, %s821_s19 }
 0x13e   : > { %p823_p6 = pnand %p822_p2, %p1021_p0 }
 0x13f   : > { %p828_p11 = por %p827_p13, %p826_p12 }
 0x140   : > { %p824_p9 = pneg %p823_p6 }
 0x142   : > { %p829_p1 = pnand %p828_p11, %p824_p9 }
 0x144   : > { %832 = shalt.err (!%p829_p1)
}
 0x145   : > { %651 = dma.vmem_to_hbm [thread:$0]  (%p1021_p0), %s446_s18, 128, %s443_s15, %s431_s7  }
 0x146 PF: > { %s457_s27 = sand.u32 1, %s875_s20   ;;  %p1151_p4 = scmp.ne.s32.totalorder %s1142_s28, 0 }
 0x147   : > { %p1152_p8 = scmp.ge.s32.totalorder %s895_s25, 2  ;;  %s458_s17 = scalar_lea.sflag [#allocation5], %s457_s27 }
 0x149   : > { %p665_p10 = pnand %p1152_p8, %p1151_p4 }
 0x14b   : > { %p666_p5 = pneg %p665_p10 }
 0x14d   : > { %870 = dma.done.wait (%p666_p5), %s458_s17, 128  }
 0x14e   : > { %872 = vsyncadd (%p666_p5), %s458_s17, 4294967168  ;;  %s25_s25 = sadd.s32 1, %s895_s25   ;;  %s1153_s16 = sld [smem:[#allocation14_spill]] }
 0x14f   : > { %p22_p7 = scmp.ge.s32.totalorder %s25_s25, 4   ;;  %s1154_s20 = smov %s879_s21 }
 0x150   : > { %s1155_s21 = smov %s883_s22  ;;  %s1156_s22 = smov %s1030_s26 }
 0x151   : > { %s1157_s23 = smov %s891_s24  ;;  %24 = sbr.rel (!%p22_p7) target bundleno = 11 (0xb), region = 106 }
 0x154   : > { %s1158_s24 = smov %s1153_s16 }
 0x156   :  { %463 = vsyncpa [#allocation4], 1 }
 0x157   :  { %465 = vsyncpa [#allocation4 + $0x1], 1 }
 0x158   :  { %466 = vsyncpa [#allocation7], 1 }
 0x159   :  { %468 = vsyncpa [#allocation7 + $0x1], 1 }
 0x15a   :  { %469 = vsyncpa [#allocation5], 1 }
 0x15b   :  { %471 = vsyncpa [#allocation5 + $0x1], 1 }

</bundles_post_ra>
